<compile_context>
chip_gen: v7x
topology: tpu7x:2x2x1
jax: 0.10.0
libtpu: 0.0.40
codegen_flags: <defaults>
</compile_context>

<pallas_src>
import functools
import math

import jax
import jax.numpy as jnp
import numpy as np
from jax.experimental import pallas as pl
from jax.experimental.pallas import tpu as pltpu


def _round_up(v, m):
    return ((v + m - 1) // m) * m


def actor_kernel(x_ref, noise_ref, w1_ref, b1_ref, w2_ref, b2_ref,
                 w3_ref, b3_ref, out_ref,
                 *, log_std_min, log_std_max, action_dim, a_pad, matmul_dtype):
    x = x_ref[...]
    noise = noise_ref[...].astype(jnp.float32)        # (tb, a_pad), zero padded

    def mm(a, w_ref):
        # bf16 MXU inputs, f32 accumulation.
        return jnp.dot(a.astype(matmul_dtype), w_ref[...],
                       preferred_element_type=jnp.float32)

    # --- MLP trunk: Linear -> ReLU -> Linear -> ReLU ------------------------
    h = jnp.maximum(mm(x, w1_ref) + b1_ref[...], 0.0)
    h = jnp.maximum(mm(h, w2_ref) + b2_ref[...], 0.0)

    # --- Fused head: single matmul, lane-aligned halves ----------------------
    # Columns [0:a_pad) of w3 hold the (padded) mu head, [a_pad:2*a_pad) hold
    # the (padded) log_std head, so both slices below are vreg-aligned.
    y = mm(h, w3_ref) + b3_ref[...]                    # (tb, 2*a_pad)
    mu = y[:, :a_pad]
    log_std = jnp.tanh(y[:, a_pad:])
    log_std = log_std_min + 0.5 * (log_std_max - log_std_min) * (log_std + 1.0)

    # --- Reparameterized sample + Gaussian log-prob (lane-masked) -----------
    std = jnp.exp(log_std)
    pi = mu + noise * std

    lane = jax.lax.broadcasted_iota(jnp.int32, mu.shape, 1)
    valid = lane < action_dim                          # real action lanes only

    g = -0.5 * noise * noise - log_std
    log_pi = jnp.sum(jnp.where(valid, g, 0.0), axis=-1, keepdims=True)
    log_pi = log_pi - 0.5 * math.log(2.0 * math.pi) * action_dim

    # --- Squash (tanh + log-det correction) ---------------------------------
    mu_t = jnp.tanh(mu)
    pi_t = jnp.tanh(pi)
    corr = jnp.log(jnp.maximum(1.0 - pi_t * pi_t, 0.0) + 1e-6)
    log_pi = log_pi - jnp.sum(jnp.where(valid, corr, 0.0), axis=-1, keepdims=True)

    # --- Single lane-dense output slab, one unmasked store ------------------
    # [ mu_t (a_pad) | pi_t (a_pad) | log_std in lanes <A, log_pi broadcast in
    #   the padding lanes >=A ]  (extra log_pi chunk only if A == a_pad).
    log_pi_b = jnp.broadcast_to(log_pi, mu.shape)
    if action_dim < a_pad:
        third = jnp.where(valid, log_std, log_pi_b)
        slab = jnp.concatenate([mu_t, pi_t, third], axis=-1)
    else:
        slab = jnp.concatenate([mu_t, pi_t, log_std, log_pi_b], axis=-1)
    out_ref[...] = slab.astype(out_ref.dtype)


def actor_forward(x, noise, params, *, log_std_min, log_std_max,
                  block_rows=512, min_grid_steps=1, matmul_dtype=jnp.bfloat16):
    """Actor forward pass.  Set min_grid_steps=2 on v7x (2 TensorCores)."""
    B, D = x.shape
    H = params["w1"].shape[1]
    A = noise.shape[-1]
    a_pad = _round_up(A, 128)
    fold = A < a_pad
    out_w = (3 if fold else 4) * a_pad
    wd = matmul_dtype

    # Pack the (H, 2A) head into lane-aligned halves (mu cols at [0:A),
    # log_std cols at [a_pad:a_pad+A)); zero-fill the padding columns so the
    # padded output lanes stay benign.
    w3p = jnp.zeros((H, 2 * a_pad), jnp.float32)
    w3p = w3p.at[:, :A].set(params["w3"][:, :A])
    w3p = w3p.at[:, a_pad:a_pad + A].set(params["w3"][:, A:])
    b3p = jnp.zeros((1, 2 * a_pad), jnp.float32)
    b3p = b3p.at[:, :A].set(params["b3"][:, :A])
    b3p = b3p.at[:, a_pad:a_pad + A].set(params["b3"][:, A:])

    # Zero-pad noise to the lane-aligned width (tiny, one-time pad).
    noise_p = jnp.zeros((B, a_pad), noise.dtype).at[:, :A].set(noise)

    # Batch tiling: as few, as big steps as possible (step-overhead bound),
    # but allow >=min_grid_steps parallel steps (v7x dual TensorCore).
    steps = max(pl.cdiv(B, block_rows), min_grid_steps)
    tb = min(_round_up(pl.cdiv(B, steps), 8), _round_up(B, 8))
    grid = (pl.cdiv(B, tb),)

    kernel = functools.partial(
        actor_kernel,
        log_std_min=float(log_std_min), log_std_max=float(log_std_max),
        action_dim=A, a_pad=a_pad, matmul_dtype=matmul_dtype)

    def rows(w):
        return pl.BlockSpec((tb, w), lambda i: (i, 0))

    def whole(shape):
        return pl.BlockSpec(shape, lambda i: (0, 0))

    slab = pl.pallas_call(
        kernel,
        out_shape=jax.ShapeDtypeStruct((B, out_w), x.dtype),
        grid=grid,
        in_specs=[
            rows(D), rows(a_pad),
            whole((D, H)), whole((1, H)),
            whole((H, H)), whole((1, H)),
            whole((H, 2 * a_pad)), whole((1, 2 * a_pad)),
        ],
        out_specs=rows(out_w),
        compiler_params=pltpu.CompilerParams(
            dimension_semantics=("parallel",),
            vmem_limit_bytes=32 * 1024 * 1024),
    )(x, noise_p,
      params["w1"].astype(wd), params["b1"],
      params["w2"].astype(wd), params["b2"],
      w3p.astype(wd), b3p)

    mu = slab[:, :A]
    pi = slab[:, a_pad:a_pad + A]
    log_std = slab[:, 2 * a_pad:2 * a_pad + A]
    lp_col = (2 * a_pad + A) if fold else (3 * a_pad)
    log_pi = slab[:, lp_col:lp_col + 1]
    return mu, pi, log_pi, log_std


def reference_forward(x, noise, params, log_std_min, log_std_max):
    """Pure-JAX f32 reference mirroring the PyTorch Actor.forward."""
    h = jax.nn.relu(x @ params["w1"] + params["b1"])
    h = jax.nn.relu(h @ params["w2"] + params["b2"])
    y = h @ params["w3"] + params["b3"]
    A = y.shape[-1] // 2
    mu, log_std = y[:, :A], y[:, A:]
    log_std = jnp.tanh(log_std)
    log_std = log_std_min + 0.5 * (log_std_max - log_std_min) * (log_std + 1.0)
    std = jnp.exp(log_std)
    pi = mu + noise * std
    log_pi = jnp.sum(-0.5 * noise ** 2 - log_std, axis=-1, keepdims=True)
    log_pi = log_pi - 0.5 * np.log(2.0 * np.pi) * A
    mu = jnp.tanh(mu)
    pi = jnp.tanh(pi)
    log_pi = log_pi - jnp.sum(jnp.log(jax.nn.relu(1.0 - pi ** 2) + 1e-6),
                              axis=-1, keepdims=True)
    return mu, pi, log_pi, log_std


if __name__ == "__main__":
    B = 8              # batch
    D = 32             # encoder.out_dim (encoder itself is external)
    H = 128            # hidden_dim (lane-dense)
    A = 4              # action_shape[0]
    log_std_min, log_std_max = -10.0, 2.0

    key = jax.random.PRNGKey(0)
    kx, kn, k1, k2, k3, kb1, kb2, kb3 = jax.random.split(key, 8)
    params = {
        "w1": 0.1 * jax.random.normal(k1, (D, H), jnp.float32),
        "b1": 0.05 * jax.random.normal(kb1, (1, H), jnp.float32),
        "w2": 0.1 * jax.random.normal(k2, (H, H), jnp.float32),
        "b2": 0.05 * jax.random.normal(kb2, (1, H), jnp.float32),
        "w3": 0.1 * jax.random.normal(k3, (H, 2 * A), jnp.float32),
        "b3": 0.05 * jax.random.normal(kb3, (1, 2 * A), jnp.float32),
    }
    x = jax.random.normal(kx, (B, D), jnp.float32)       # encoder features
    noise = jax.random.normal(kn, (B, A), jnp.float32)   # torch.randn_like(mu)

    outs = actor_forward(x, noise, params,
                         log_std_min=log_std_min, log_std_max=log_std_max)
    outs = jax.block_until_ready(outs)

    refs = reference_forward(x, noise, params, log_std_min, log_std_max)
    # bf16 MXU inputs (perf feedback) => loosened tolerance vs. f32 reference.
    for o, r in zip(outs, refs):
        np.testing.assert_allclose(np.asarray(o), np.asarray(r),
                                   rtol=5e-2, atol=5e-2)
    print("KERNEL_OK")
</pallas_src>

<mosaic_0001>
module attributes {stable_mosaic.version = 11 : i64} {
  func.func @actor_kernel(%arg0: i32, %arg1: memref<8x32xf32, #tpu.memory_space<vmem>>, %arg2: memref<8x128xf32, #tpu.memory_space<vmem>>, %arg3: memref<32x128xbf16, #tpu.memory_space<vmem>>, %arg4: memref<1x128xf32, #tpu.memory_space<vmem>>, %arg5: memref<128x128xbf16, #tpu.memory_space<vmem>>, %arg6: memref<1x128xf32, #tpu.memory_space<vmem>>, %arg7: memref<128x256xbf16, #tpu.memory_space<vmem>>, %arg8: memref<1x256xf32, #tpu.memory_space<vmem>>, %arg9: memref<8x384xf32, #tpu.memory_space<vmem>>) attributes {dimension_semantics = [#tpu.dimension_semantics<parallel>], iteration_bounds = array<i64: 1>, scalar_prefetch = 0 : i64, scratch_operands = 0 : i64, tpu.core_type = #tpu.core_type<tc>, window_params = [{transform_indices = @transform_0, window_bounds = array<i64: 8, 32>}, {transform_indices = @transform_1, window_bounds = array<i64: 8, 128>}, {pipeline_mode = #tpu.pipeline_mode<synchronous>, transform_indices = @transform_2, window_bounds = array<i64: 32, 128>}, {pipeline_mode = #tpu.pipeline_mode<synchronous>, transform_indices = @transform_3, window_bounds = array<i64: 1, 128>}, {pipeline_mode = #tpu.pipeline_mode<synchronous>, transform_indices = @transform_4, window_bounds = array<i64: 128, 128>}, {pipeline_mode = #tpu.pipeline_mode<synchronous>, transform_indices = @transform_5, window_bounds = array<i64: 1, 128>}, {pipeline_mode = #tpu.pipeline_mode<synchronous>, transform_indices = @transform_6, window_bounds = array<i64: 128, 256>}, {pipeline_mode = #tpu.pipeline_mode<synchronous>, transform_indices = @transform_7, window_bounds = array<i64: 1, 256>}, {transform_indices = @transform_8, window_bounds = array<i64: 8, 384>}]} {
    %c0 = arith.constant 0 : index
    %c0_0 = arith.constant 0 : index
    %0 = vector.load %arg1[%c0, %c0_0] : memref<8x32xf32, #tpu.memory_space<vmem>>, vector<8x32xf32>
    %c0_1 = arith.constant 0 : index
    %c0_2 = arith.constant 0 : index
    %1 = vector.load %arg2[%c0_1, %c0_2] : memref<8x128xf32, #tpu.memory_space<vmem>>, vector<8x128xf32>
    %2 = arith.truncf %0 : vector<8x32xf32> to vector<8x32xbf16>
    %c0_3 = arith.constant 0 : index
    %c0_4 = arith.constant 0 : index
    %3 = vector.load %arg3[%c0_3, %c0_4] : memref<32x128xbf16, #tpu.memory_space<vmem>>, vector<32x128xbf16>
    %cst = arith.constant dense<0.000000e+00> : vector<8x128xf32>
    %4 = tpu.matmul %2, %3, %cst {dimension_numbers = #tpu.dot_dimension_numbers<[1], [0], [0], [1], [0, 0, 1, 1], [], []>} : vector<8x32xbf16>, vector<32x128xbf16>, vector<8x128xf32> -> vector<8x128xf32>
    %c0_5 = arith.constant 0 : index
    %c0_6 = arith.constant 0 : index
    %5 = vector.load %arg4[%c0_5, %c0_6] : memref<1x128xf32, #tpu.memory_space<vmem>>, vector<1x128xf32>
    %6 = vector.broadcast %5 : vector<1x128xf32> to vector<8x128xf32>
    %7 = arith.addf %4, %6 : vector<8x128xf32>
    %cst_7 = arith.constant 0.000000e+00 : f32
    %8 = vector.broadcast %cst_7 : f32 to vector<8x128xf32>
    %9 = arith.maximumf %7, %8 : vector<8x128xf32>
    %10 = arith.truncf %9 : vector<8x128xf32> to vector<8x128xbf16>
    %c0_8 = arith.constant 0 : index
    %c0_9 = arith.constant 0 : index
    %11 = vector.load %arg5[%c0_8, %c0_9] : memref<128x128xbf16, #tpu.memory_space<vmem>>, vector<128x128xbf16>
    %cst_10 = arith.constant dense<0.000000e+00> : vector<8x128xf32>
    %12 = tpu.matmul %10, %11, %cst_10 {dimension_numbers = #tpu.dot_dimension_numbers<[1], [0], [0], [1], [0, 0, 1, 1], [], []>} : vector<8x128xbf16>, vector<128x128xbf16>, vector<8x128xf32> -> vector<8x128xf32>
    %c0_11 = arith.constant 0 : index
    %c0_12 = arith.constant 0 : index
    %13 = vector.load %arg6[%c0_11, %c0_12] : memref<1x128xf32, #tpu.memory_space<vmem>>, vector<1x128xf32>
    %14 = vector.broadcast %13 : vector<1x128xf32> to vector<8x128xf32>
    %15 = arith.addf %12, %14 : vector<8x128xf32>
    %cst_13 = arith.constant 0.000000e+00 : f32
    %16 = vector.broadcast %cst_13 : f32 to vector<8x128xf32>
    %17 = arith.maximumf %15, %16 : vector<8x128xf32>
    %18 = arith.truncf %17 : vector<8x128xf32> to vector<8x128xbf16>
    %c0_14 = arith.constant 0 : index
    %c0_15 = arith.constant 0 : index
    %19 = vector.load %arg7[%c0_14, %c0_15] : memref<128x256xbf16, #tpu.memory_space<vmem>>, vector<128x256xbf16>
    %cst_16 = arith.constant dense<0.000000e+00> : vector<8x256xf32>
    %20 = tpu.matmul %18, %19, %cst_16 {dimension_numbers = #tpu.dot_dimension_numbers<[1], [0], [0], [1], [0, 0, 1, 1], [], []>} : vector<8x128xbf16>, vector<128x256xbf16>, vector<8x256xf32> -> vector<8x256xf32>
    %c0_17 = arith.constant 0 : index
    %c0_18 = arith.constant 0 : index
    %21 = vector.load %arg8[%c0_17, %c0_18] : memref<1x256xf32, #tpu.memory_space<vmem>>, vector<1x256xf32>
    %22 = vector.broadcast %21 : vector<1x256xf32> to vector<8x256xf32>
    %23 = arith.addf %20, %22 : vector<8x256xf32>
    %24 = vector.extract_strided_slice %23 {offsets = [0, 0], sizes = [8, 128], strides = [1, 1]} : vector<8x256xf32> to vector<8x128xf32>
    %25 = vector.extract_strided_slice %23 {offsets = [0, 128], sizes = [8, 128], strides = [1, 1]} : vector<8x256xf32> to vector<8x128xf32>
    %26 = math.tanh %25 : vector<8x128xf32>
    %cst_19 = arith.constant 1.000000e+00 : f32
    %27 = vector.broadcast %cst_19 : f32 to vector<8x128xf32>
    %28 = arith.addf %26, %27 : vector<8x128xf32>
    %cst_20 = arith.constant 6.000000e+00 : f32
    %29 = vector.broadcast %cst_20 : f32 to vector<8x128xf32>
    %30 = arith.mulf %29, %28 : vector<8x128xf32>
    %cst_21 = arith.constant -1.000000e+01 : f32
    %31 = vector.broadcast %cst_21 : f32 to vector<8x128xf32>
    %32 = arith.addf %31, %30 : vector<8x128xf32>
    %33 = math.exp %32 : vector<8x128xf32>
    %34 = arith.mulf %1, %33 : vector<8x128xf32>
    %35 = arith.addf %24, %34 : vector<8x128xf32>
    %36 = tpu.iota {dimensions = array<i32: 1>} : vector<8x128xi32>
    %c4_i32 = arith.constant 4 : i32
    %37 = vector.broadcast %c4_i32 : i32 to vector<8x128xi32>
    %38 = arith.cmpi slt, %36, %37 : vector<8x128xi32>
    %cst_22 = arith.constant -5.000000e-01 : f32
    %39 = vector.broadcast %cst_22 : f32 to vector<8x128xf32>
    %40 = arith.mulf %39, %1 : vector<8x128xf32>
    %41 = arith.mulf %40, %1 : vector<8x128xf32>
    %42 = arith.subf %41, %32 : vector<8x128xf32>
    %cst_23 = arith.constant 0.000000e+00 : f32
    %43 = vector.broadcast %cst_23 : f32 to vector<8x128xf32>
    %44 = arith.select %38, %42, %43 : vector<8x128xi1>, vector<8x128xf32>
    %cst_24 = arith.constant dense<0.000000e+00> : vector<8xf32>
    %45 = vector.multi_reduction <add>, %44, %cst_24 [1] : vector<8x128xf32> to vector<8xf32>
    %46 = vector.shape_cast %45 : vector<8xf32> to vector<8x1xf32>
    %cst_25 = arith.constant 3.67575407 : f32
    %47 = vector.broadcast %cst_25 : f32 to vector<8x1xf32>
    %48 = arith.subf %46, %47 : vector<8x1xf32>
    %49 = math.tanh %24 : vector<8x128xf32>
    %50 = math.tanh %35 : vector<8x128xf32>
    %51 = arith.mulf %50, %50 : vector<8x128xf32>
    %cst_26 = arith.constant 1.000000e+00 : f32
    %52 = vector.broadcast %cst_26 : f32 to vector<8x128xf32>
    %53 = arith.subf %52, %51 : vector<8x128xf32>
    %cst_27 = arith.constant 0.000000e+00 : f32
    %54 = vector.broadcast %cst_27 : f32 to vector<8x128xf32>
    %55 = arith.maximumf %53, %54 : vector<8x128xf32>
    %cst_28 = arith.constant 9.99999997E-7 : f32
    %56 = vector.broadcast %cst_28 : f32 to vector<8x128xf32>
    %57 = arith.addf %55, %56 : vector<8x128xf32>
    %58 = math.log %57 : vector<8x128xf32>
    %cst_29 = arith.constant 0.000000e+00 : f32
    %59 = vector.broadcast %cst_29 : f32 to vector<8x128xf32>
    %60 = arith.select %38, %58, %59 : vector<8x128xi1>, vector<8x128xf32>
    %cst_30 = arith.constant dense<0.000000e+00> : vector<8xf32>
    %61 = vector.multi_reduction <add>, %60, %cst_30 [1] : vector<8x128xf32> to vector<8xf32>
    %62 = vector.shape_cast %61 : vector<8xf32> to vector<8x1xf32>
    %63 = arith.subf %48, %62 : vector<8x1xf32>
    %64 = vector.shape_cast %63 : vector<8x1xf32> to vector<8x1xf32>
    %65 = vector.broadcast %64 : vector<8x1xf32> to vector<8x128xf32>
    %66 = arith.select %38, %32, %65 : vector<8x128xi1>, vector<8x128xf32>
    %67 = tpu.concatenate %49, %50, %66 in 1 : vector<8x128xf32>, vector<8x128xf32>, vector<8x128xf32> -> vector<8x384xf32>
    %c0_31 = arith.constant 0 : index
    %c0_32 = arith.constant 0 : index
    %68 = vector.load %arg9[%c0_31, %c0_32] : memref<8x384xf32, #tpu.memory_space<vmem>>, vector<8x384xf32>
    tpu.vector_store %arg9[%c0_31, %c0_32], %67 {strides = array<i32>} : memref<8x384xf32, #tpu.memory_space<vmem>>, vector<8x384xf32>,
    return
  }
  func.func @transform_0(%arg0: i32) -> (i32, i32) {
    %c0_i32 = arith.constant 0 : i32
    %c0_i32_0 = arith.constant 0 : i32
    return %arg0, %c0_i32 : i32, i32
  }
  func.func @transform_1(%arg0: i32) -> (i32, i32) {
    %c0_i32 = arith.constant 0 : i32
    %c0_i32_0 = arith.constant 0 : i32
    return %arg0, %c0_i32 : i32, i32
  }
  func.func @transform_2(%arg0: i32) -> (i32, i32) {
    %c0_i32 = arith.constant 0 : i32
    %c0_i32_0 = arith.constant 0 : i32
    %c0_i32_1 = arith.constant 0 : i32
    return %c0_i32, %c0_i32_0 : i32, i32
  }
  func.func @transform_3(%arg0: i32) -> (i32, i32) {
    %c0_i32 = arith.constant 0 : i32
    %c0_i32_0 = arith.constant 0 : i32
    %c0_i32_1 = arith.constant 0 : i32
    return %c0_i32, %c0_i32_0 : i32, i32
  }
  func.func @transform_4(%arg0: i32) -> (i32, i32) {
    %c0_i32 = arith.constant 0 : i32
    %c0_i32_0 = arith.constant 0 : i32
    %c0_i32_1 = arith.constant 0 : i32
    return %c0_i32, %c0_i32_0 : i32, i32
  }
  func.func @transform_5(%arg0: i32) -> (i32, i32) {
    %c0_i32 = arith.constant 0 : i32
    %c0_i32_0 = arith.constant 0 : i32
    %c0_i32_1 = arith.constant 0 : i32
    return %c0_i32, %c0_i32_0 : i32, i32
  }
  func.func @transform_6(%arg0: i32) -> (i32, i32) {
    %c0_i32 = arith.constant 0 : i32
    %c0_i32_0 = arith.constant 0 : i32
    %c0_i32_1 = arith.constant 0 : i32
    return %c0_i32, %c0_i32_0 : i32, i32
  }
  func.func @transform_7(%arg0: i32) -> (i32, i32) {
    %c0_i32 = arith.constant 0 : i32
    %c0_i32_0 = arith.constant 0 : i32
    %c0_i32_1 = arith.constant 0 : i32
    return %c0_i32, %c0_i32_0 : i32, i32
  }
  func.func @transform_8(%arg0: i32) -> (i32, i32) {
    %c0_i32 = arith.constant 0 : i32
    %c0_i32_0 = arith.constant 0 : i32
    return %arg0, %c0_i32 : i32, i32
  }
}

</mosaic_0001>

<bundles_post_ra>
// kernel: tpu_custom_call.1
= control target key start
LH: loop header
LB: loop body
LE: loop exit
PB: predicated region body
PF: predicated region fallthrough
CT: control target
= control target key end

     0   :  { %13 = vsyncpa [#allocation3], 0  ;;  %s895_s0 = inlined_call_operand.hbm [shape: f32[8,32], index: 0, kind: input, shape index: {}]   ;;  %s896_s1 = inlined_call_operand.hbm [shape: f32[8,128], index: 1, kind: input, shape index: {}]   ;;  %s897_s2 = inlined_call_operand.hbm [shape: bf16[32,128], index: 2, kind: input, shape index: {}]   ;;  %s898_s3 = inlined_call_operand.vmem [shape: f32[1,128], index: 3, kind: input, shape index: {}]   ;;  %s899_s4 = inlined_call_operand.hbm [shape: bf16[128,128], index: 4, kind: input, shape index: {}]   ;;  %s900_s5 = inlined_call_operand.vmem [shape: f32[1,128], index: 5, kind: input, shape index: {}]   ;;  %s901_s6 = inlined_call_operand.hbm [shape: bf16[128,256], index: 6, kind: input, shape index: {}]   ;;  %s902_s7 = inlined_call_operand.vmem [shape: f32[1,256], index: 7, kind: input, shape index: {}]   ;;  %s903_s8 = inlined_call_operand.hbm [shape: f32[8,384], index: 8, kind: output, shape index: {}]  }
   0x1   :  { %14 = vsyncpa [#allocation6], 0 }
   0x2   :  { %15 = vsyncpa [#allocation9], 0 }
   0x3   :  { %16 = vsyncpa [#allocation4], 0  ;;  %s747_s27 = smov [#allocation5]   ;;  %s607_s9 = scalar_lea.hbm %s896_s1, 128 }
   0x4   :  { %s33_s28 = sshll.u32 %s747_s27, 4  ;;  %p608_p0 = scmp.ne.s32.totalorder %s896_s1, %s607_s9  ;;  %s34_s28 = int_to_ptr.vmem [resolvable:$true] %s33_s28 }
   0x5   :  { %p611_p1 = scmp.lt.u32.totalorder %s607_s9, %s896_s1 }
   0x7   :  { %p613_p2 = pnand %p611_p1, %p608_p0 }
   0x9   :  { %616 = shalt.err (!%p613_p2)
}
   0xa   :  { %s617_s14 = scalar_lea.vmem %s34_s28, 128  ;;  %p622_p4 = scmp.lt.s32.totalorder %s34_s28, %s34_s28 }
   0xb   :  { %p618_p3 = scmp.ne.s32.totalorder %s34_s28, %s617_s14  ;;  %p623_p5 = scmp.lt.s32.totalorder %s617_s14, %s617_s14 }
   0xd   :  { %p624_p6 = por %p623_p5, %p622_p4 }
   0xf   :  { %p625_p7 = pnand %p624_p6, %p618_p3 }
  0x11   :  { %628 = shalt.err (!%p625_p7)
}
  0x12   :  { %36 = dma.hbm_to_vmem [thread:$0]  %s896_s1, 128, %s34_s28, [#allocation6]  }
  0x13   :  { %s748_s17 = smov [#allocation8]   ;;  %s749_s19 = smov [#allocation2]  }
  0x14   :  { %s56_s18 = sshll.u32 %s748_s17, 4  ;;  %s23_s20 = sshll.u32 %s749_s19, 4  ;;  %s57_s18 = int_to_ptr.vmem [resolvable:$true] %s56_s18  ;;  %s24_s20 = int_to_ptr.vmem [resolvable:$true] %s23_s20 }
  0x15   :  { %s629_s23 = scalar_lea.hbm %s899_s4, 1024 }
  0x16   :  { %p630_p8 = scmp.ne.s32.totalorder %s899_s4, %s629_s23  ;;  %p633_p9 = scmp.lt.u32.totalorder %s629_s23, %s899_s4 }
  0x18   :  { %p635_p10 = pnand %p633_p9, %p630_p8 }
  0x1a   :  { %638 = shalt.err (!%p635_p10)
}
  0x1b   :  { %s639_s1 = scalar_lea.vmem %s57_s18, 1024  ;;  %p644_p12 = scmp.lt.s32.totalorder %s57_s18, %s57_s18 }
  0x1c   :  { %p640_p11 = scmp.ne.s32.totalorder %s57_s18, %s639_s1  ;;  %p645_p13 = scmp.lt.s32.totalorder %s639_s1, %s639_s1 }
  0x1e   :  { %p646_p0 = por %p645_p13, %p644_p12 }
  0x20   :  { %p647_p1 = pnand %p646_p0, %p640_p11 }
  0x22   :  { %650 = shalt.err (!%p647_p1)
}
  0x23   :  { %s750_s28 = smov 64   ;;  %s751_s29 = smov 4  }
  0x24   :  { %62 = dma.hbm_to_vmem [thread:$0]  %s899_s4, 1024, %s57_s18, [#allocation9], %s750_s28, %s750_s28, %s751_s29  }
  0x25   :  { %s651_s12 = scalar_lea.hbm %s895_s0, 128 }
  0x26   :  { %p652_p2 = scmp.ne.s32.totalorder %s895_s0, %s651_s12  ;;  %p655_p3 = scmp.lt.u32.totalorder %s651_s12, %s895_s0 }
  0x28   :  { %p657_p4 = pnand %p655_p3, %p652_p2 }
  0x2a   :  { %660 = shalt.err (!%p657_p4)
}
  0x2b   :  { %s661_s17 = scalar_lea.vmem %s24_s20, 128  ;;  %p666_p6 = scmp.lt.s32.totalorder %s24_s20, %s24_s20 }
  0x2c   :  { %p662_p5 = scmp.ne.s32.totalorder %s24_s20, %s661_s17  ;;  %p667_p7 = scmp.lt.s32.totalorder %s661_s17, %s661_s17 }
  0x2e   :  { %p668_p8 = por %p667_p7, %p666_p6 }
  0x30   :  { %p669_p9 = pnand %p668_p8, %p662_p5 }
  0x32   :  { %672 = shalt.err (!%p669_p9)
}
  0x33   :  { %26 = dma.hbm_to_vmem [thread:$0]  %s895_s0, 128, %s24_s20, [#allocation3]  }
  0x34   :  { %s752_s19 = smov [#allocation7]   ;;  %s753_s22 = smov [#allocation10]  }
  0x35   :  { %s42_s21 = sshll.u32 %s752_s19, 4  ;;  %s70_s23 = sshll.u32 %s753_s22, 4  ;;  %s43_s21 = int_to_ptr.vmem [resolvable:$true] %s42_s21  ;;  %s71_s23 = int_to_ptr.vmem [resolvable:$true] %s70_s23 }
  0x36   :  { %s673_s26 = scalar_lea.hbm %s897_s2, 256 }
  0x37   :  { %p674_p10 = scmp.ne.s32.totalorder %s897_s2, %s673_s26  ;;  %p677_p11 = scmp.lt.u32.totalorder %s673_s26, %s897_s2 }
  0x39   :  { %p679_p12 = pnand %p677_p11, %p674_p10 }
  0x3b   :  { %682 = shalt.err (!%p679_p12)
}
  0x3c   :  { %s683_s0 = scalar_lea.vmem %s43_s21, 256  ;;  %p688_p0 = scmp.lt.s32.totalorder %s43_s21, %s43_s21 }
  0x3d   :  { %p684_p13 = scmp.ne.s32.totalorder %s43_s21, %s683_s0  ;;  %p689_p1 = scmp.lt.s32.totalorder %s683_s0, %s683_s0 }
  0x3f   :  { %p690_p2 = por %p689_p1, %p688_p0 }
  0x41   :  { %p691_p3 = pnand %p690_p2, %p684_p13 }
  0x43   :  { %694 = shalt.err (!%p691_p3)
}
  0x44   :  { %48 = dma.hbm_to_vmem [thread:$0]  %s897_s2, 256, %s43_s21, [#allocation6], %s750_s28, %s750_s28, %s751_s29  }
  0x45   :  { %s695_s13 = scalar_lea.hbm %s901_s6, 2048 }
  0x46   :  { %p696_p4 = scmp.ne.s32.totalorder %s901_s6, %s695_s13  ;;  %p699_p5 = scmp.lt.u32.totalorder %s695_s13, %s901_s6 }
  0x48   :  { %p701_p6 = pnand %p699_p5, %p696_p4 }
  0x4a   :  { %704 = shalt.err (!%p701_p6)
}
  0x4b   :  { %s705_s4 = scalar_lea.vmem %s71_s23, 2048  ;;  %p710_p8 = scmp.lt.s32.totalorder %s71_s23, %s71_s23 }
  0x4c   :  { %p706_p7 = scmp.ne.s32.totalorder %s71_s23, %s705_s4  ;;  %p711_p9 = scmp.lt.s32.totalorder %s705_s4, %s705_s4 }
  0x4e   :  { %p712_p10 = por %p711_p9, %p710_p8 }
  0x50   :  { %p713_p11 = pnand %p712_p10, %p706_p7 }
  0x52   :  { %716 = shalt.err (!%p713_p11)
}
  0x53   :  { %s754_s2 = smov 128   ;;  %s755_s28 = smov 8  }
  0x54   :  { %76 = dma.hbm_to_vmem [thread:$0]  %s901_s6, 2048, %s71_s23, [#allocation9], %s754_s2, %s754_s2, %s755_s28  }
  0x55   :  { %739 = dma.done.wait [#allocation3], 128  }
  0x56   :  { %740 = vsyncadd [#allocation3], 4294967168 }
  0x57   :  { %741 = dma.done.wait [#allocation6], 384  }
  0x58   :  { %742 = vsyncadd [#allocation6], 4294966912 }
  0x59   :  { %743 = dma.done.wait [#allocation9], 3072  }
  0x5a   :  { %744 = vsyncadd [#allocation9], 4294964224  ;;  %v756_v0 = vmov 0.0   ;;  %vm757_vm0 = vmmov 0   ;;  %v563_v1 = vld [vmem:[#allocation7] sm:$0xff]   ;;  %v564_v2 = vld [vmem:[#allocation7 + $0x8] sm:$0xff]   ;;  %v298_v46 = vlaneseq }
  0x5b   :  { %522 = vmatprep.subr.bf16.mxu0 %v756_v0  ;;  %526 = vmatprep.mubr.msk.bf16.mxu0 %vm757_vm0, %v756_v0  ;;  %v95_v3 = vld [vmem:[#allocation2] sm:$0xff]  ;;  %v566_v6 = vld [vmem:[#allocation8 + $0x8] sm:$0xff]   ;;  %vm121_vm1 = vcmask 261120   ;;  %v567_v7 = vld [vmem:[#allocation8 + $0x10] sm:$0xff]   ;;  %v758_v37 = vmov 0  }
  0x5c   :  { %530 = vmatprep.subr.bf16.mxu1 %v756_v0  ;;  %546 = vmatprep.mubr.msk.bf16.mxu1 %vm757_vm0, %v756_v0  ;;  %v565_v4 = vld [vmem:[#allocation8] sm:$0xff]   ;;  %v97_v5 = vpack.c.bf16 %v95_v3, %v95_v3  ;;  %v568_v8 = vld [vmem:[#allocation8 + $0x18] sm:$0xff]   ;;  %v570_v10 = vld [vmem:[#allocation8 + $0x28] sm:$0xff]   ;;  %v299_v47 = vshrl.u32 %v298_v46, 7 }
  0x5d   :  { %523 = vmatpush3.bf16.msra.mxu0 %v563_v1  ;;  %531 = vmatpush3.bf16.msra.mxu1 %v565_v4  ;;  %v569_v9 = vld [vmem:[#allocation8 + $0x20] sm:$0xff]   ;;  %v571_v11 = vld [vmem:[#allocation8 + $0x30] sm:$0xff]   ;;  %v572_v12 = vld [vmem:[#allocation8 + $0x38] sm:$0xff]  }
  0x5e   :  { %524 = vmatprep.subr.bf16.mxu0 %v756_v0  ;;  %532 = vmatprep.subr.bf16.mxu1 %v756_v0  ;;  %v573_v13 = vld [vmem:[#allocation10] ss:$8 sps:$4 sm:$0xff]   ;;  %v575_v14 = vld [vmem:[#allocation10 + $0x4] ss:$8 sps:$4 sm:$0xff]   ;;  %v578_v15 = vld [vmem:[#allocation10 + $0x14] ss:$8 sps:$4 sm:$0xff]  }
  0x5f   :  { %v576_v16 = vld [vmem:[#allocation10 + $0x10] ss:$8 sps:$4 sm:$0xff]   ;;  %v581_v17 = vld [vmem:[#allocation10 + $0x24] ss:$8 sps:$4 sm:$0xff]   ;;  %v579_v18 = vld [vmem:[#allocation10 + $0x20] ss:$8 sps:$4 sm:$0xff]  }
  0x60   :  { %v584_v19 = vld [vmem:[#allocation10 + $0x34] ss:$8 sps:$4 sm:$0xff]   ;;  %v582_v20 = vld [vmem:[#allocation10 + $0x30] ss:$8 sps:$4 sm:$0xff]   ;;  %v587_v21 = vld [vmem:[#allocation10 + $0x44] ss:$8 sps:$4 sm:$0xff]  }
  0x61   :  { %525 = vmatpush3.bf16.msra.mxu0 %v564_v2  ;;  %533 = vmatpush3.bf16.msra.mxu1 %v566_v6  ;;  %v585_v22 = vld [vmem:[#allocation10 + $0x40] ss:$8 sps:$4 sm:$0xff]   ;;  %v590_v23 = vld [vmem:[#allocation10 + $0x54] ss:$8 sps:$4 sm:$0xff]   ;;  %v588_v24 = vld [vmem:[#allocation10 + $0x50] ss:$8 sps:$4 sm:$0xff]  }
  0x62   :  { %534 = vmatprep.subr.bf16.mxu1 %v756_v0  ;;  %388 = vmatprep.subr.bf16.mxu0 %v575_v14  ;;  %v593_v25 = vld [vmem:[#allocation10 + $0x64] ss:$8 sps:$4 sm:$0xff]   ;;  %v591_v26 = vld [vmem:[#allocation10 + $0x60] ss:$8 sps:$4 sm:$0xff]   ;;  %v596_v35 = vld [vmem:[#allocation10 + $0x74] ss:$8 sps:$4 sm:$0xff]  }
  0x63   :  { %v480_v27 = vld [vmem:[%s898_s3] ss:$0 sm:$0xff]  ;;  %v594_v36 = vld [vmem:[#allocation10 + $0x70] ss:$8 sps:$4 sm:$0xff]   ;;  %v300_v48 = vsub.s32 0, %v299_v47  ;;  %v304_v50 = vsub.s32 1, %v299_v47 }
  0x64   :  { %527 = vmatmul.mubr.msk.bf16.vlgmr.msra.gmra.mrb[0].mxu0 %vm121_vm1, %v97_v5  ;;  %v484_v38 = vld [vmem:[%s900_s5] ss:$0 sm:$0xff]  ;;  %v96_v59 = vld [vmem:[#allocation5] sm:$0xff]  ;;  %s759_s5 = smov [#allocation11]  }
  0x65   :  { %535 = vmatpush3.bf16.msra.mxu1 %v567_v7  ;;  %389 = vmatpush1.bf16.msra.mxu0 %v573_v13  ;;  %v296_v49 = vld [vmem:[%s902_s7] sm:$0x3]  ;;  %v440_v61 = vmul.f32 -0.5, %v96_v59  ;;  %s469_s7 = sshll.u32 %s759_s5, 4  ;;  %s470_s7 = int_to_ptr.vmem [resolvable:$true] %s469_s7 }
  0x66   :  { %536 = vmatprep.subr.bf16.mxu1 %v756_v0  ;;  %390 = vmatprep.subr.bf16.mxu0 %v578_v15  ;;  %v301_v51 = vrot.slane %v296_v49, %v300_v48  ;;  %v305_v52 = vrot.slane %v296_v49, %v304_v50  ;;  %s717_s24 = scalar_lea.vmem %s470_s7, 384  ;;  %p722_p13 = scmp.lt.s32.totalorder %s470_s7, %s470_s7 }
  0x67   :  { %420 = vmatprep.mubr.bf16.mxu0 %v758_v37  ;;  %v441_v2 = vmul.f32 %v440_v61, %v96_v59  ;;  %p718_p12 = scmp.ne.s32.totalorder %s470_s7, %s717_s24  ;;  %p723_p0 = scmp.lt.s32.totalorder %s717_s24, %s717_s24 }
  0x69   :  { %537 = vmatpush3.bf16.msra.mxu1 %v568_v8  ;;  %391 = vmatpush1.bf16.msra.mxu0 %v576_v16  ;;  %p724_p1 = por %p723_p0, %p722_p13 }
  0x6a   :  { %538 = vmatprep.subr.bf16.mxu1 %v756_v0  ;;  %392 = vmatprep.subr.bf16.mxu0 %v581_v17 }
  0x6b   :  { %p725_p2 = pnand %p724_p1, %p718_p12 }
  0x6d   :  { %539 = vmatpush3.bf16.msra.mxu1 %v569_v9  ;;  %393 = vmatpush1.bf16.msra.mxu0 %v579_v18 }
  0x6e   :  { %540 = vmatprep.subr.bf16.mxu1 %v756_v0  ;;  %394 = vmatprep.subr.bf16.mxu0 %v584_v19 }
  0x71   :  { %541 = vmatpush3.bf16.msra.mxu1 %v570_v10  ;;  %395 = vmatpush1.bf16.msra.mxu0 %v582_v20 }
  0x72   :  { %542 = vmatprep.subr.bf16.mxu1 %v756_v0  ;;  %396 = vmatprep.subr.bf16.mxu0 %v587_v21 }
  0x75   :  { %543 = vmatpush3.bf16.msra.mxu1 %v571_v11  ;;  %397 = vmatpush1.bf16.msra.mxu0 %v585_v22 }
  0x76   :  { %544 = vmatprep.subr.bf16.mxu1 %v756_v0  ;;  %398 = vmatprep.subr.bf16.mxu0 %v590_v23  ;;  %v438_v0 = vand.u32 127, %v298_v46 }
  0x78   :  { %vm439_vm2 = vcmp.lt.s32.totalorder %v438_v0, 4 }
  0x79   :  { %545 = vmatpush3.bf16.msra.mxu1 %v572_v12  ;;  %399 = vmatpush1.bf16.msra.mxu0 %v588_v24 }
  0x7a   :  { %400 = vmatprep.subr.bf16.mxu0 %v593_v25 }
  0x7d   :  { %401 = vmatpush1.bf16.msra.mxu0 %v591_v26 }
  0x7e   :  { %402 = vmatprep.subr.bf16.mxu0 %v596_v35 }
  0x81   :  { %403 = vmatpush1.bf16.msra.mxu0 %v594_v36 }
 0x137   :  { %v159_v28 = vpop.f32.mrb[0].mxu0 }
 0x138   :  { %v160_v29 = vadd.f32 %v480_v27, %v159_v28  ;;  %v528_v30 = vpop.f32.mrb[1].mxu0 }
 0x139   :  { %v162_v31 = vpop.f32.mrb[2].mxu0 }
 0x13a   :  { %v165_v32 = vmax.f32 %v160_v29, 0.0  ;;  %v529_v33 = vpop.f32.mrb[3].mxu0 }
 0x13c   :  { %v166_v34 = vpack.c.bf16 %v165_v32, %v165_v32 }
 0x13e   :  { %547 = vmatmul.mubr.bf16.vlgmr.msra.gmra.mrb[0].mxu1 %v166_v34 }
 0x211   :  { %v272_v39 = vpop.f32.mrb[0].mxu1 }
 0x212   :  { %v273_v40 = vadd.f32 %v484_v38, %v272_v39  ;;  %v548_v41 = vpop.f32.mrb[1].mxu1 }
 0x213   :  { %v275_v42 = vpop.f32.mrb[2].mxu1 }
 0x214   :  { %v278_v43 = vmax.f32 %v273_v40, 0.0  ;;  %v549_v44 = vpop.f32.mrb[3].mxu1 }
 0x216   :  { %v279_v45 = vpack.c.bf16 %v278_v43, %v278_v43 }
 0x218   :  { %421 = vmatmul.mubr.bf16.vlgmr.msra.gmra.mrb[4].mxu0 %v279_v45 }
 0x2eb   :  { %v422_v53 = vpop.f32.mrb[4].mxu0 }
 0x2ec   :  { %v423_v54 = vadd.f32 %v422_v53, %v301_v51  ;;  %v424_v55 = vpop.f32.mrb[5].mxu0 }
 0x2ed   :  { %v425_v56 = vadd.f32 %v424_v55, %v305_v52  ;;  %v426_v57 = vpop.f32.mrb[6].mxu0 }
 0x2ee   :  { %597 = vtanh.f32 %v423_v54  ;;  %v427_v58 = vpop.f32.mrb[7].mxu0 }
 0x2ef   :  { %599 = vtanh.f32 %v425_v56 }
 0x2f8   :  { %v598_v60 = vpop.eup %597 }
 0x2f9   :  { %v600_v62 = vpop.eup %599  ;;  %460 = vst [vmem:[#allocation11] sm:$0xff] %v598_v60 }
 0x2fa   :  { %v430_v63 = vadd.f32 1.0, %v600_v62 }
 0x2fc   :  { %v431_v1 = vmul.f32 6.0, %v430_v63 }
 0x2fe   :  { %v432_v3 = vadd.f32 -10.0, %v431_v1 }
 0x300   :  { %v433_v4 = vmul.f32 1.442695, %v432_v3  ;;  %v442_v5 = vsub.f32 %v441_v2, %v432_v3 }
 0x302   :  { %601 = vpow2.f32 %v433_v4  ;;  %v443_v6 = vsel %vm439_vm2, %v442_v5, 0.0 }
 0x303   :  { %444 = vadd.xlane.f32.xlu0 %v443_v6 }
 0x30c   :  { %v602_v7 = vpop.eup %601 }
 0x30d   :  { %v435_v8 = vmul.f32 %v602_v7, %v96_v59 }
 0x30f   :  { %v436_v9 = vadd.f32 %v435_v8, %v423_v54 }
 0x311   :  { %603 = vtanh.f32 %v436_v9 }
 0x31b   :  { %v604_v10 = vpop.eup %603 }
 0x31c   :  { %461 = vst [vmem:[#allocation11 + $0x8] sm:$0xff] %v604_v10  ;;  %v449_v11 = vmul.f32 %v604_v10, %v604_v10 }
 0x31e   :  { %v450_v12 = vsub.f32 1.0, %v449_v11 }
 0x320   :  { %v451_v13 = vmax.f32 %v450_v12, 0.0 }
 0x322   :  { %v452_v14 = vadd.f32 1e-06, %v451_v13 }
 0x324   :  { %605 = vlog2.f32 %v452_v14 }
 0x32e   :  { %v606_v15 = vpop.eup %605 }
 0x32f   :  { %v454_v16 = vmul.f32 0.6931472, %v606_v15 }
 0x331   :  { %v455_v17 = vsel %vm439_vm2, %v454_v16, 0.0 }
 0x332   :  { %456 = vadd.xlane.f32.xlu0 %v455_v17 }
 0x390   :  { %v445_v18 = vpop.xlane.xlu0 %444 }
 0x391   :  { %v509_v19 = vadd.f32 -3.675754, %v445_v18 }
 0x3bf   :  { %v457_v20 = vpop.xlane.xlu0 %456 }
 0x3c0   :  { %v458_v21 = vsub.f32 %v509_v19, %v457_v20 }
 0x3c2   :  { %v459_v22 = vsel %vm439_vm2, %v432_v3, %v458_v21 }
 0x3c3   :  { %462 = vst [vmem:[#allocation11 + $0x10] sm:$0xff] %v459_v22 }
 0x3c4   :  { %728 = shalt.err (!%p725_p2)
}
 0x3c5   :  { %s729_s27 = scalar_lea.hbm %s903_s8, 384 }
 0x3c6   :  { %p730_p3 = scmp.ne.s32.totalorder %s903_s8, %s729_s27  ;;  %p733_p4 = scmp.lt.u32.totalorder %s729_s27, %s903_s8 }
 0x3c8   :  { %p735_p5 = pnand %p733_p4, %p730_p3 }
 0x3ca   :  { %738 = shalt.err (!%p735_p5)
}
 0x3cb   :  { %472 = dma.vmem_to_hbm [thread:$0]  %s470_s7, 384, %s903_s8, [#allocation4]  }
 0x3cc   :  { %745 = dma.done.wait [#allocation4], 384  }
 0x3cd   :  { %746 = vsyncadd [#allocation4], 4294966912 }
 0x3ce   :  { %476 = vsyncpa [#allocation3], 1 }
 0x3cf   :  { %477 = vsyncpa [#allocation6], 1 }
 0x3d0   :  { %478 = vsyncpa [#allocation9], 1 }
 0x3d1   :  { %479 = vsyncpa [#allocation4], 1 }

</bundles_post_ra>
